<compile_context>
chip_gen: v5e
topology: v5e:2x2
jax: 0.10.0
libtpu: 0.0.40
codegen_flags: <defaults>
</compile_context>

<pallas_src>
import jax
import jax.numpy as jnp
from jax.experimental import pallas as pl
from jax.experimental.pallas import tpu as pltpu


def conv_branches_kernel(x_ref, w_ref, o_ref):
    """Single invocation, whole problem in VMEM.

    x_ref : (K+1, N*H*W)  im2col patches (tap-major, cin-minor rows) + ones row
    w_ref : (Cout, K+1)   fused weights (branch a taps + branch b at center tap)
                          with the fused bias as the last column
    o_ref : (Cout, N*H*W) fused branch outputs, lane-dense
    """
    acc = jnp.dot(w_ref[...], x_ref[...], preferred_element_type=jnp.float32)
    o_ref[...] = jnp.maximum(acc, 0.0)  # bias already in the contraction


def conv_branches(x_nchw, wa, ba, wb, bb):
    """ConvBranches forward: x is NCHW (PyTorch convention), output is NCHW."""
    n, cin, h, w = x_nchw.shape
    ca = wa.shape[-1]
    cb = wb.shape[-1]
    cout = ca + cb
    k = 9 * cin

    x = x_nchw.astype(jnp.float32)

    # ---- wrapper-side im2col, K-major with the batch under the lane axis -----
    x_pad = jnp.pad(x, ((0, 0), (0, 0), (1, 1), (1, 1)))        # SAME pad for 3x3
    taps = [x_pad[:, :, kh:kh + h, kw:kw + w]
            for kh in range(3) for kw in range(3)]              # 9 x (N,Cin,H,W)
    # (9, N, Cin, H, W) -> (9, Cin, N, H, W) -> (9*Cin, N*H*W).
    # K rows ordered (tap, cin) to match wa.reshape(9*cin, ca); columns (n,h,w).
    patches = (jnp.stack(taps, axis=0)
               .transpose(0, 2, 1, 3, 4)
               .reshape(k, n * h * w))
    # Bias-as-ones-row: appended AFTER the existing 36 K rows.
    patches = jnp.concatenate(
        [patches, jnp.ones((1, n * h * w), jnp.float32)], axis=0)   # (K+1, N*H*W)

    # ---- wrapper-side branch + bias fusion into one weight -------------------
    # Branch b (1x1 conv) lives at the center tap (kh=kw=1) => rows
    # [4*cin : 5*cin]; all other taps are zero for it.
    wa_flat = wa.astype(jnp.float32).reshape(k, ca)
    wb_full = jnp.zeros((k, cb), jnp.float32).at[4 * cin:5 * cin, :].set(
        wb.astype(jnp.float32))
    w_kc = jnp.concatenate([wa_flat, wb_full], axis=1)              # (K, Cout)
    bias = jnp.concatenate(
        [ba.reshape(-1), bb.reshape(-1)]).astype(jnp.float32)       # (Cout,)
    w_t = jnp.concatenate([w_kc, bias[None, :]], axis=0).T          # (Cout, K+1)

    out = pl.pallas_call(
        conv_branches_kernel,
        out_shape=jax.ShapeDtypeStruct((cout, n * h * w), jnp.float32),
        in_specs=[
            pl.BlockSpec(memory_space=pltpu.MemorySpace.VMEM),   # patches
            pl.BlockSpec(memory_space=pltpu.MemorySpace.VMEM),   # fused weights
        ],
        out_specs=pl.BlockSpec(memory_space=pltpu.MemorySpace.VMEM),
    )(patches, w_t)

    # (Cout, N*H*W) -> (N, Cout, H, W): ~32 KiB transpose in XLA, negligible.
    return out.reshape(cout, n, h, w).transpose(1, 0, 2, 3)


def _reference(x_nchw, wa, ba, wb, bb):
    """Pure-JAX reference (lax conv, NCHW) for correctness checking."""
    x = x_nchw.astype(jnp.float32)
    dn = ("NCHW", "HWIO", "NCHW")
    ya = jax.lax.conv_general_dilated(x, wa, (1, 1), "SAME",
                                      dimension_numbers=dn)
    ya = jnp.maximum(ya + ba.reshape(1, -1, 1, 1), 0.0)
    yb = jax.lax.conv_general_dilated(x, wb.reshape(1, 1, *wb.shape), (1, 1),
                                      "SAME", dimension_numbers=dn)
    yb = jnp.maximum(yb + bb.reshape(1, -1, 1, 1), 0.0)
    return jnp.concatenate([ya, yb], axis=1)  # torch.cat(dim=1) semantics


if __name__ == "__main__":
    key = jax.random.PRNGKey(0)
    k_x, k_wa, k_ba, k_wb, k_bb = jax.random.split(key, 5)

    N, CIN, H, W = 2, 4, 16, 16
    CA, CB = 8, 8

    x = jax.random.normal(k_x, (N, CIN, H, W), dtype=jnp.float32)
    wa = jax.random.normal(k_wa, (3, 3, CIN, CA), dtype=jnp.float32) * 0.1
    ba = jax.random.normal(k_ba, (1, CA), dtype=jnp.float32) * 0.1
    wb = jax.random.normal(k_wb, (CIN, CB), dtype=jnp.float32) * 0.1
    bb = jax.random.normal(k_bb, (1, CB), dtype=jnp.float32) * 0.1

    out = jax.block_until_ready(conv_branches(x, wa, ba, wb, bb))
    ref = jax.block_until_ready(_reference(x, wa, ba, wb, bb))

    assert out.shape == (N, CA + CB, H, W), out.shape
    assert jnp.allclose(out, ref, atol=1e-4, rtol=1e-4), "mismatch vs reference"
    print("KERNEL_OK")
</pallas_src>

<mosaic_0001>
module attributes {stable_mosaic.version = 11 : i64} {
  func.func @conv_branches_kernel(%arg0: memref<37x512xf32, #tpu.memory_space<vmem>>, %arg1: memref<16x37xf32, #tpu.memory_space<vmem>>, %arg2: memref<16x512xf32, #tpu.memory_space<vmem>>) attributes {dimension_semantics = [], scalar_prefetch = 0 : i64, scratch_operands = 0 : i64, tpu.core_type = #tpu.core_type<tc>} {
    %c0 = arith.constant 0 : index
    %c0_0 = arith.constant 0 : index
    %0 = vector.load %arg1[%c0, %c0_0] : memref<16x37xf32, #tpu.memory_space<vmem>>, vector<16x37xf32>
    %c0_1 = arith.constant 0 : index
    %c0_2 = arith.constant 0 : index
    %1 = vector.load %arg0[%c0_1, %c0_2] : memref<37x512xf32, #tpu.memory_space<vmem>>, vector<37x512xf32>
    %cst = arith.constant dense<0.000000e+00> : vector<16x512xf32>
    %2 = tpu.matmul %0, %1, %cst {dimension_numbers = #tpu.dot_dimension_numbers<[1], [0], [0], [1], [0, 0, 1, 1], [], []>} : vector<16x37xf32>, vector<37x512xf32>, vector<16x512xf32> -> vector<16x512xf32>
    %cst_3 = arith.constant 0.000000e+00 : f32
    %3 = vector.broadcast %cst_3 : f32 to vector<16x512xf32>
    %4 = arith.maximumf %2, %3 : vector<16x512xf32>
    %c0_4 = arith.constant 0 : index
    %c0_5 = arith.constant 0 : index
    %5 = vector.load %arg2[%c0_4, %c0_5] : memref<16x512xf32, #tpu.memory_space<vmem>>, vector<16x512xf32>
    tpu.vector_store %arg2[%c0_4, %c0_5], %4 {strides = array<i32>} : memref<16x512xf32, #tpu.memory_space<vmem>>, vector<16x512xf32>,
    return
  }
}

</mosaic_0001>

<bundles_post_ra>
// kernel: tpu_custom_call.1
= control target key start
LH: loop header
LB: loop body
LE: loop exit
PB: predicated region body
PF: predicated region fallthrough
CT: control target
= control target key end

     0   :  { %7 = vsyncpa [#allocation3], 0  ;;  %s360_s0 = inlined_call_operand.hbm [shape: f32[37,512], index: 0, kind: input, shape index: {}]   ;;  %s361_s1 = inlined_call_operand.hbm [shape: f32[16,37], index: 1, kind: input, shape index: {}]   ;;  %s362_s2 = inlined_call_operand.hbm [shape: f32[16,512], index: 2, kind: output, shape index: {}]  }
   0x1   :  { %8 = vsyncpa [#allocation6], 0 }
   0x2   :  { %9 = vsyncpa [#allocation4], 0  ;;  %s14_s11 = sshll.u32 %s360_s0, 4  ;;  %s311_s12 = smov [#allocation2]   ;;  %s15_s11 = int_to_ptr.hbm [resolvable:$true] %s14_s11 }
   0x3   :  { %s16_s13 = sshll.u32 %s311_s12, 4  ;;  %s27_s16 = sshll.u32 %s361_s1, 4  ;;  %s17_s13 = int_to_ptr.vmem [resolvable:$true] %s16_s13  ;;  %s28_s16 = int_to_ptr.hbm [resolvable:$true] %s27_s16 }
   0x4   :  { %s312_s17 = smov 512   ;;  %s313_s18 = smov 32  }
   0x5   :  { %22 = dma.hbm_to_vmem [thread:$0]  %s15_s11, 2560, %s17_s13, [#allocation3], %s312_s17, %s312_s17, %s313_s18  }
   0x6   :  { %s314_s19 = smov [#allocation5]   ;;  %s315_s21 = smov 128  }
   0x7   :  { %s29_s20 = sshll.u32 %s314_s19, 4  ;;  %s316_s0 = smov 8   ;;  %s30_s20 = int_to_ptr.vmem [resolvable:$true] %s29_s20 }
   0x8   :  { %35 = dma.hbm_to_vmem [thread:$0]  %s28_s16, 256, %s30_s20, [#allocation6], %s315_s21, %s315_s21, %s316_s0  }
   0x9   :  { %305 = dma.done.wait [#allocation3], 2560  }
   0xa   :  { %306 = vsyncadd [#allocation3], 4294964736 }
   0xb   :  { %307 = dma.done.wait [#allocation6], 256  }
   0xc   :  { %308 = vsyncadd [#allocation6], 4294967040  ;;  %vm73_vm0 = vcmask 1044480   ;;  %v64_v0 = vld [vmem:[#allocation2 + $0x90] sm:$0x1f]  ;;  %v61_v3 = vld [vmem:[#allocation2 + $0x78] sm:$0xff] }
   0xd   :  { %v65_v1 = vld [vmem:[#allocation2 + $0x98] sm:$0x1f]  ;;  %v60_v2 = vld [vmem:[#allocation2 + $0x70] sm:$0xff]  ;;  %220 = vmatpush.msk.msra.mxu2 %vm73_vm0, %v64_v0  ;;  %v62_v6 = vld [vmem:[#allocation2 + $0x80] sm:$0x1f]  ;;  %vm66_vm1 = vcmask 302080  }
   0xe   :  { %223 = vmatpush.msk.msra.mxu3 %vm73_vm0, %v65_v1  ;;  %v56_v4 = vld [vmem:[#allocation2 + $0x50] sm:$0xff]  ;;  %v57_v5 = vld [vmem:[#allocation2 + $0x58] sm:$0xff]  ;;  %v63_v7 = vld [vmem:[#allocation2 + $0x88] sm:$0x1f]  ;;  %214 = vmatpush.msk.msra.mxu0 %vm73_vm0, %v62_v6  ;;  %s317_s1 = smov [#allocation7]   ;;  %s200_s25 = sshll.u32 %s362_s2, 4  ;;  %s201_s25 = int_to_ptr.hbm [resolvable:$true] %s200_s25 }
   0xf   :  { %144 = vmatpush.msra.mxu2 %v60_v2  ;;  %v58_v8 = vld [vmem:[#allocation2 + $0x60] sm:$0xff]  ;;  %v59_v9 = vld [vmem:[#allocation2 + $0x68] sm:$0xff]  ;;  %217 = vmatpush.msk.msra.mxu1 %vm73_vm0, %v63_v7  ;;  %v52_v10 = vld [vmem:[#allocation2 + $0x30] sm:$0xff]  ;;  %s198_s22 = sshll.u32 %s317_s1, 4  ;;  %s199_s22 = int_to_ptr.vmem [resolvable:$true] %s198_s22 }
  0x10   :  { %167 = vmatpush.msra.mxu3 %v61_v3  ;;  %v53_v11 = vld [vmem:[#allocation2 + $0x38] sm:$0xff]  ;;  %v54_v12 = vld [vmem:[#allocation2 + $0x40] sm:$0xff]  ;;  %v55_v13 = vld [vmem:[#allocation2 + $0x48] sm:$0xff]  ;;  %98 = vmatpush.msra.mxu0 %v58_v8 }
  0x11   :  { %145 = vmatpush.msra.mxu2 %v56_v4  ;;  %121 = vmatpush.msra.mxu1 %v59_v9  ;;  %v48_v14 = vld [vmem:[#allocation2 + $0x10] sm:$0xff]  ;;  %v49_v15 = vld [vmem:[#allocation2 + $0x18] sm:$0xff]  ;;  %v44_v16 = vld [vmem:[#allocation5] sm:$0xff] }
  0x12   :  { %168 = vmatpush.msra.mxu3 %v57_v5  ;;  %99 = vmatpush.msra.mxu0 %v54_v12  ;;  %v50_v17 = vld [vmem:[#allocation2 + $0x20] sm:$0xff]  ;;  %v51_v18 = vld [vmem:[#allocation2 + $0x28] sm:$0xff] }
  0x13   :  { %146 = vmatpush.msra.mxu2 %v52_v10  ;;  %122 = vmatpush.msra.mxu1 %v55_v13  ;;  %v46_v19 = vld [vmem:[#allocation2] sm:$0xff]  ;;  %v47_v20 = vld [vmem:[#allocation2 + $0x8] sm:$0xff] }
  0x14   :  { %169 = vmatpush.msra.mxu3 %v53_v11  ;;  %100 = vmatpush.msra.mxu0 %v50_v17  ;;  %v45_v21 = vld [vmem:[#allocation5 + $0x8] sm:$0xff] }
  0x15   :  { %147 = vmatpush.msra.mxu2 %v48_v14  ;;  %123 = vmatpush.msra.mxu1 %v51_v18 }
  0x16   :  { %170 = vmatpush.msra.mxu3 %v49_v15  ;;  %221 = vmatmul.msk.f32.vlgmr.msra.gmra.mxu2 %vm66_vm1, %v44_v16 }
  0x17   :  { %224 = vmatmul.msk.f32.vlgmr.msra.gmra.mxu3 %vm66_vm1, %v44_v16  ;;  %101 = vmatpush.msra.mxu0 %v46_v19 }
  0x18   :  { %124 = vmatpush.msra.mxu1 %v47_v20  ;;  %215 = vmatmul.msk.f32.vlgmr.msra.gmra.mxu0 %vm66_vm1, %v44_v16 }
  0x19   :  { %218 = vmatmul.msk.f32.vlgmr.msra.gmra.mxu1 %vm66_vm1, %v44_v16 }
  0x1e   :  { %222 = vmatmul.msk.f32.gmra.mxu2 %vm66_vm1, %v45_v21 }
  0x1f   :  { %225 = vmatmul.msk.f32.gmra.mxu3 %vm66_vm1, %v45_v21 }
  0x20   :  { %216 = vmatmul.msk.f32.gmra.mxu0 %vm66_vm1, %v45_v21 }
  0x21   :  { %219 = vmatmul.msk.f32.gmra.mxu1 %vm66_vm1, %v45_v21 }
  0x95   :  { %v103_v22 = vpop.f32.mrf.mxu0 }
  0x96   :  { %v126_v23 = vpop.f32.mrf.mxu1  ;;  %v178_v24 = vmax.f32 %v103_v22, 0.0 }
  0x97   :  { %v179_v25 = vmax.f32 %v126_v23, 0.0 }
  0x98   :  { %186 = vst [vmem:[#allocation7] sm:$0xff] %v178_v24 }
  0x99   :  { %v149_v26 = vpop.f32.mrf.mxu2  ;;  %187 = vst [vmem:[#allocation7 + $0x8] sm:$0xff] %v179_v25 }
  0x9a   :  { %v172_v27 = vpop.f32.mrf.mxu3  ;;  %v180_v28 = vmax.f32 %v149_v26, 0.0 }
  0x9b   :  { %v181_v29 = vmax.f32 %v172_v27, 0.0 }
  0x9c   :  { %188 = vst [vmem:[#allocation7 + $0x10] sm:$0xff] %v180_v28 }
  0x9d   :  { %189 = vst [vmem:[#allocation7 + $0x18] sm:$0xff] %v181_v29  ;;  %v106_v30 = vpop.f32.mrf.mxu0 }
  0x9e   :  { %v129_v31 = vpop.f32.mrf.mxu1  ;;  %v182_v32 = vmax.f32 %v106_v30, 0.0 }
  0x9f   :  { %v183_v33 = vmax.f32 %v129_v31, 0.0 }
  0xa0   :  { %190 = vst [vmem:[#allocation7 + $0x20] sm:$0xff] %v182_v32 }
  0xa1   :  { %v152_v34 = vpop.f32.mrf.mxu2  ;;  %191 = vst [vmem:[#allocation7 + $0x28] sm:$0xff] %v183_v33 }
  0xa2   :  { %v175_v35 = vpop.f32.mrf.mxu3  ;;  %v184_v36 = vmax.f32 %v152_v34, 0.0 }
  0xa3   :  { %v185_v37 = vmax.f32 %v175_v35, 0.0 }
  0xa4   :  { %192 = vst [vmem:[#allocation7 + $0x30] sm:$0xff] %v184_v36 }
  0xa5   :  { %193 = vst [vmem:[#allocation7 + $0x38] sm:$0xff] %v185_v37 }
  0xa6   :  { %206 = dma.vmem_to_hbm [thread:$0]  %s199_s22, 1024, %s201_s25, [#allocation4], %s312_s17, %s312_s17, %s313_s18  }
  0xa7   :  { %309 = dma.done.wait [#allocation4], 1024  }
  0xa8   :  { %310 = vsyncadd [#allocation4], 4294966272 }
  0xa9   :  { %211 = vsyncpa [#allocation3], 1 }
  0xaa   :  { %212 = vsyncpa [#allocation6], 1 }
  0xab   :  { %213 = vsyncpa [#allocation4], 1 }

</bundles_post_ra>
